<compile_context>
chip_gen: v7x
topology: tpu7x:2x2x1
jax: 0.10.0
libtpu: 0.0.40
codegen_flags: <defaults>
</compile_context>

<pallas_src>
import functools

import jax
import jax.numpy as jnp
from jax.experimental import pallas as pl
from jax.experimental.pallas import tpu as pltpu


def _softmax_gather_kernel(pred_ref, tgt_ref, maskprob_ref, nll_ref, vcnt_ref,
                           *, ignore_label):
    x = pred_ref[...].astype(jnp.float32)        # (C, R, 128) logits, f32 in VMEM
    t = tgt_ref[...]                             # (R, 128) int32 labels

    m = jnp.max(x, axis=0)                       # (R, 128): VALU max across vregs
    lse = jnp.log(jnp.sum(jnp.exp(x - m), axis=0)) + m

    valid = t != ignore_label                    # (R, 128) bool
    t_safe = jnp.where(valid, t, 0)              # target * valid_mask
    cls = jax.lax.broadcasted_iota(jnp.int32, x.shape, 0)
    # no f32 one-hot temporary: masked select + reduce over the class axis
    logit_t = jnp.sum(jnp.where(cls == t_safe, x, jnp.float32(0.0)), axis=0)
    nll = lse - logit_t                          # per-pixel cross entropy
    # reuse nll for the target prob (single exp); clamp ulp overshoot so valid
    # pixels always satisfy prob <= 1.0.
    prob_t = jnp.minimum(jnp.exp(-nll), jnp.float32(1.0))

    # ignored (and padded) pixels are encoded as 2.0: strictly above any valid
    # prob, so validity is recoverable later as (mask_prob <= 1.0) and the
    # sentinel never wins the k-th-smallest selection while OHEM is active.
    maskprob_ref[...] = jnp.where(valid, prob_t, jnp.float32(2.0))
    nll_ref[...] = jnp.where(valid, nll, jnp.float32(0.0))
    # per-tile valid count (lane partials) -> num_valid without a glue pass
    vcnt_ref[...] = jnp.sum(valid.astype(jnp.int32), axis=0, keepdims=True)


def _ohem_partial_kernel(nll_ref, mp_ref, thr_ref, ohem_ref, sum_ref, cnt_ref):
    i = pl.program_id(1)                         # inner ("arbitrary") axis

    @pl.when(i == 0)
    def _():
        sum_ref[...] = jnp.zeros_like(sum_ref)
        cnt_ref[...] = jnp.zeros_like(cnt_ref)

    thr = thr_ref[0, 0]
    do_ohem = ohem_ref[0, 0] > 0

    mp = mp_ref[...]                             # (R, 128)
    valid = mp <= jnp.float32(1.0)               # recovered validity
    kept = jnp.logical_or(jnp.logical_not(do_ohem), mp <= thr)
    final = jnp.logical_and(valid, kept)

    w = final.astype(jnp.float32)
    sum_ref[...] += jnp.sum(nll_ref[...] * w, axis=0, keepdims=True)
    cnt_ref[...] += jnp.sum(final.astype(jnp.int32), axis=0, keepdims=True)


def _pick_tile_rows(total_rows, per_row_bytes, budget_bytes, max_rows, batch):
    """Largest (8,128)-legal row-tile that divides total_rows and fits VMEM."""
    cands = [r for r in range(1, total_rows + 1)
             if total_rows % r == 0 and (r % 8 == 0 or r == total_rows)]
    fits = [r for r in cands if r <= max_rows and r * per_row_bytes <= budget_bytes]
    if not fits:
        return min(cands)
    if batch == 1:
        # v7x: keep >= 2 grid steps on kernel 1's parallel axes (2 TensorCores)
        split = [r for r in fits if total_rows // r >= 2]
        if split:
            return max(split)
    return max(fits)


def prob_ohem_cross_entropy_2d(pred, target, *, ignore_label=255, thresh=0.6,
                               min_kept=256, vmem_budget_bytes=20 << 20,
                               max_tile_pixels=64 * 1024):
    b, c, h, w = pred.shape
    hw = h * w
    n = b * hw

    # Dense (rows, 128) pixel layout; padded pixels get ignore_label so they
    # are invalid and never counted (free views unless padding is required).
    pad = (-hw) % 128
    pred3 = pred.reshape(b, c, hw)
    tgt3 = target.reshape(b, hw).astype(jnp.int32)
    if pad:
        pred3 = jnp.pad(pred3, ((0, 0), (0, 0), (0, pad)))
        tgt3 = jnp.pad(tgt3, ((0, 0), (0, pad)), constant_values=ignore_label)
    hw_pad = hw + pad
    rows = hw_pad // 128
    pred4 = pred3.reshape(b, c, rows, 128)
    tgt4 = tgt3.reshape(b, rows, 128)

    # Per-128-pixel-row VMEM cost: double-buffered input + ~3 f32 class-sized
    # temps + double-buffered int32 targets + 2 double-buffered f32 outputs +
    # a few f32 pixel-wise temps.
    in_bytes = pred.dtype.itemsize
    per_row_bytes = 128 * (c * (2 * in_bytes + 3 * 4) + 2 * 4 + 2 * 2 * 4 + 8 * 4)
    r_tile = _pick_tile_rows(rows, per_row_bytes, vmem_budget_bytes,
                             max_rows=max_tile_pixels // 128, batch=b)
    gi = rows // r_tile
    grid = (b, gi)

    kernel1 = functools.partial(_softmax_gather_kernel, ignore_label=ignore_label)
    mask_prob, nll, vcnt = pl.pallas_call(
        kernel1,
        out_shape=(jax.ShapeDtypeStruct((b, rows, 128), jnp.float32),
                   jax.ShapeDtypeStruct((b, rows, 128), jnp.float32),
                   jax.ShapeDtypeStruct((b, gi, 1, 128), jnp.int32)),
        grid=grid,
        in_specs=[pl.BlockSpec((None, c, r_tile, 128), lambda bb, i: (bb, 0, i, 0)),
                  pl.BlockSpec((None, r_tile, 128), lambda bb, i: (bb, i, 0))],
        out_specs=(pl.BlockSpec((None, r_tile, 128), lambda bb, i: (bb, i, 0)),
                   pl.BlockSpec((None, r_tile, 128), lambda bb, i: (bb, i, 0)),
                   pl.BlockSpec((None, None, 1, 128), lambda bb, i: (bb, i, 0, 0))),
        compiler_params=pltpu.CompilerParams(
            dimension_semantics=("parallel", "parallel"),
            vmem_limit_bytes=48 << 20),
    )(pred4, tgt4)

    num_valid = jnp.sum(vcnt)                    # exact int32 count

    # OHEM threshold = max(thresh, k-th smallest target prob); gating matches
    # torch: OHEM applies iff num_valid > 0 and num_valid >= min_kept.
    thr = jnp.float32(thresh)
    if min_kept > 0:
        k = min(n, int(min_kept))
        # TODO(synk): exact global k-th-smallest still needs a full-array
        # top_k in glue; an in-kernel histogram in kernel 1 plus a narrow
        # refinement pass would remove this HBM pass for large min_kept.
        kth = -jax.lax.top_k(-mask_prob.reshape(-1), k)[0][k - 1]
        thr = jnp.maximum(thr, kth)
    do_ohem = jnp.logical_and(num_valid > 0, num_valid >= min_kept)

    sums, cnts = pl.pallas_call(
        _ohem_partial_kernel,
        out_shape=(jax.ShapeDtypeStruct((b, 1, 128), jnp.float32),
                   jax.ShapeDtypeStruct((b, 1, 128), jnp.int32)),
        grid=grid,
        in_specs=[pl.BlockSpec((None, r_tile, 128), lambda bb, i: (bb, i, 0)),
                  pl.BlockSpec((None, r_tile, 128), lambda bb, i: (bb, i, 0)),
                  pl.BlockSpec(memory_space=pltpu.MemorySpace.SMEM),
                  pl.BlockSpec(memory_space=pltpu.MemorySpace.SMEM)],
        out_specs=(pl.BlockSpec((None, 1, 128), lambda bb, i: (bb, 0, 0)),
                   pl.BlockSpec((None, 1, 128), lambda bb, i: (bb, 0, 0))),
        compiler_params=pltpu.CompilerParams(
            dimension_semantics=("parallel", "arbitrary")),
    )(nll, mask_prob,
      thr.reshape(1, 1).astype(jnp.float32),
      do_ohem.astype(jnp.int32).reshape(1, 1))

    loss_sum = jnp.sum(sums)
    kept_cnt = jnp.sum(cnts)                     # int32, exact denominator
    # reduction='mean' over kept, non-ignored pixels (0/0 -> NaN, same as
    # torch when nothing is kept -- intentional, do not "fix").
    # TODO(synk): class weights (use_weight=True) not implemented; default
    # torch path (use_weight=False) is what this matches.
    return loss_sum / kept_cnt.astype(jnp.float32)


if __name__ == "__main__":
    key = jax.random.PRNGKey(0)
    k1, k2, k3 = jax.random.split(key, 3)
    B, C, H, W = 2, 4, 16, 16
    ignore_label = 255

    pred = jax.random.normal(k1, (B, C, H, W), jnp.float32)
    target = jax.random.randint(k2, (B, H, W), 0, C)
    ignore = jax.random.uniform(k3, (B, H, W)) < 0.1
    target = jnp.where(ignore, ignore_label, target).astype(jnp.int32)

    loss = prob_ohem_cross_entropy_2d(pred, target,
                                      ignore_label=ignore_label,
                                      thresh=0.6, min_kept=256)
    jax.block_until_ready(loss)
    print("KERNEL_OK")
</pallas_src>

<mosaic_0001>
module attributes {stable_mosaic.version = 11 : i64} {
  func.func @_softmax_gather_kernel(%arg0: i32, %arg1: i32, %arg2: memref<1x4x2x128xf32, #tpu.memory_space<vmem>>, %arg3: memref<1x2x128xi32, #tpu.memory_space<vmem>>, %arg4: memref<1x2x128xf32, #tpu.memory_space<vmem>>, %arg5: memref<1x2x128xf32, #tpu.memory_space<vmem>>, %arg6: memref<1x1x1x128xi32, #tpu.memory_space<vmem>>) attributes {dimension_semantics = [#tpu.dimension_semantics<parallel>, #tpu.dimension_semantics<parallel>], iteration_bounds = array<i64: 2, 1>, scalar_prefetch = 0 : i64, scratch_operands = 0 : i64, tpu.core_type = #tpu.core_type<tc>, window_params = [{transform_indices = @transform_0, window_bounds = array<i64: 1, 4, 2, 128>}, {transform_indices = @transform_1, window_bounds = array<i64: 1, 2, 128>}, {transform_indices = @transform_2, window_bounds = array<i64: 1, 2, 128>}, {transform_indices = @transform_3, window_bounds = array<i64: 1, 2, 128>}, {transform_indices = @transform_4, window_bounds = array<i64: 1, 1, 1, 128>}]} {
    %c0 = arith.constant 0 : index
    %c0_0 = arith.constant 0 : index
    %c0_1 = arith.constant 0 : index
    %c0_2 = arith.constant 0 : index
    %0 = vector.load %arg2[%c0, %c0_0, %c0_1, %c0_2] : memref<1x4x2x128xf32, #tpu.memory_space<vmem>>, vector<1x4x2x128xf32>
    %1 = vector.shape_cast %0 : vector<1x4x2x128xf32> to vector<4x2x128xf32>
    %c0_3 = arith.constant 0 : index
    %c0_4 = arith.constant 0 : index
    %c0_5 = arith.constant 0 : index
    %2 = vector.load %arg3[%c0_3, %c0_4, %c0_5] : memref<1x2x128xi32, #tpu.memory_space<vmem>>, vector<1x2x128xi32>
    %3 = vector.shape_cast %2 : vector<1x2x128xi32> to vector<2x128xi32>
    %cst = arith.constant dense<0xFF800000> : vector<2x128xf32>
    %4 = vector.multi_reduction <maximumf>, %1, %cst [0] : vector<4x2x128xf32> to vector<2x128xf32>
    %5 = vector.shape_cast %4 : vector<2x128xf32> to vector<1x2x128xf32>
    %6 = vector.broadcast %5 : vector<1x2x128xf32> to vector<4x2x128xf32>
    %7 = arith.subf %1, %6 : vector<4x2x128xf32>
    %8 = math.exp %7 : vector<4x2x128xf32>
    %cst_6 = arith.constant dense<0.000000e+00> : vector<2x128xf32>
    %9 = vector.multi_reduction <add>, %8, %cst_6 [0] : vector<4x2x128xf32> to vector<2x128xf32>
    %10 = math.log %9 : vector<2x128xf32>
    %11 = arith.addf %10, %4 : vector<2x128xf32>
    %c255_i32 = arith.constant 255 : i32
    %12 = vector.broadcast %c255_i32 : i32 to vector<2x128xi32>
    %13 = arith.cmpi ne, %3, %12 : vector<2x128xi32>
    %c0_i32 = arith.constant 0 : i32
    %14 = vector.broadcast %c0_i32 : i32 to vector<2x128xi32>
    %15 = arith.select %13, %3, %14 : vector<2x128xi1>, vector<2x128xi32>
    %16 = tpu.iota {dimensions = array<i32: 0>} : vector<4x2x128xi32>
    %17 = vector.shape_cast %15 : vector<2x128xi32> to vector<1x2x128xi32>
    %18 = vector.broadcast %17 : vector<1x2x128xi32> to vector<4x2x128xi32>
    %19 = arith.cmpi eq, %16, %18 : vector<4x2x128xi32>
    %cst_7 = arith.constant 0.000000e+00 : f32
    %20 = vector.broadcast %cst_7 : f32 to vector<4x2x128xf32>
    %21 = arith.select %19, %1, %20 : vector<4x2x128xi1>, vector<4x2x128xf32>
    %cst_8 = arith.constant dense<0.000000e+00> : vector<2x128xf32>
    %22 = vector.multi_reduction <add>, %21, %cst_8 [0] : vector<4x2x128xf32> to vector<2x128xf32>
    %23 = arith.subf %11, %22 : vector<2x128xf32>
    %cst_9 = arith.constant 0.000000e+00 : f32
    %24 = vector.broadcast %cst_9 : f32 to vector<2x128xf32>
    %25 = arith.subf %24, %23 : vector<2x128xf32>
    %26 = math.exp %25 : vector<2x128xf32>
    %cst_10 = arith.constant 1.000000e+00 : f32
    %27 = vector.broadcast %cst_10 : f32 to vector<2x128xf32>
    %28 = arith.minimumf %26, %27 : vector<2x128xf32>
    %cst_11 = arith.constant 2.000000e+00 : f32
    %29 = vector.broadcast %cst_11 : f32 to vector<2x128xf32>
    %30 = arith.select %13, %28, %29 : vector<2x128xi1>, vector<2x128xf32>
    %c0_12 = arith.constant 0 : index
    %c0_13 = arith.constant 0 : index
    %c0_14 = arith.constant 0 : index
    %31 = vector.load %arg4[%c0_12, %c0_13, %c0_14] : memref<1x2x128xf32, #tpu.memory_space<vmem>>, vector<1x2x128xf32>
    %32 = vector.shape_cast %31 : vector<1x2x128xf32> to vector<2x128xf32>
    %33 = vector.shape_cast %30 : vector<2x128xf32> to vector<1x2x128xf32>
    tpu.vector_store %arg4[%c0_12, %c0_13, %c0_14], %33 {strides = array<i32>} : memref<1x2x128xf32, #tpu.memory_space<vmem>>, vector<1x2x128xf32>,
    %cst_15 = arith.constant 0.000000e+00 : f32
    %34 = vector.broadcast %cst_15 : f32 to vector<2x128xf32>
    %35 = arith.select %13, %23, %34 : vector<2x128xi1>, vector<2x128xf32>
    %c0_16 = arith.constant 0 : index
    %c0_17 = arith.constant 0 : index
    %c0_18 = arith.constant 0 : index
    %36 = vector.load %arg5[%c0_16, %c0_17, %c0_18] : memref<1x2x128xf32, #tpu.memory_space<vmem>>, vector<1x2x128xf32>
    %37 = vector.shape_cast %36 : vector<1x2x128xf32> to vector<2x128xf32>
    %38 = vector.shape_cast %35 : vector<2x128xf32> to vector<1x2x128xf32>
    tpu.vector_store %arg5[%c0_16, %c0_17, %c0_18], %38 {strides = array<i32>} : memref<1x2x128xf32, #tpu.memory_space<vmem>>, vector<1x2x128xf32>,
    %39 = arith.extui %13 : vector<2x128xi1> to vector<2x128xi32>
    %cst_19 = arith.constant dense<0> : vector<128xi32>
    %40 = vector.multi_reduction <add>, %39, %cst_19 [0] : vector<2x128xi32> to vector<128xi32>
    %41 = vector.shape_cast %40 : vector<128xi32> to vector<1x128xi32>
    %c0_20 = arith.constant 0 : index
    %c0_21 = arith.constant 0 : index
    %c0_22 = arith.constant 0 : index
    %c0_23 = arith.constant 0 : index
    %42 = vector.load %arg6[%c0_20, %c0_21, %c0_22, %c0_23] : memref<1x1x1x128xi32, #tpu.memory_space<vmem>>, vector<1x1x1x128xi32>
    %43 = vector.shape_cast %42 : vector<1x1x1x128xi32> to vector<1x128xi32>
    %44 = vector.shape_cast %41 : vector<1x128xi32> to vector<1x1x1x128xi32>
    tpu.vector_store %arg6[%c0_20, %c0_21, %c0_22, %c0_23], %44 {strides = array<i32>} : memref<1x1x1x128xi32, #tpu.memory_space<vmem>>, vector<1x1x1x128xi32>,
    return
  }
  func.func @transform_0(%arg0: i32, %arg1: i32) -> (i32, i32, i32, i32) {
    %c0_i32 = arith.constant 0 : i32
    %c0_i32_0 = arith.constant 0 : i32
    %c0_i32_1 = arith.constant 0 : i32
    return %arg0, %c0_i32, %arg1, %c0_i32_0 : i32, i32, i32, i32
  }
  func.func @transform_1(%arg0: i32, %arg1: i32) -> (i32, i32, i32) {
    %c0_i32 = arith.constant 0 : i32
    %c0_i32_0 = arith.constant 0 : i32
    return %arg0, %arg1, %c0_i32 : i32, i32, i32
  }
  func.func @transform_2(%arg0: i32, %arg1: i32) -> (i32, i32, i32) {
    %c0_i32 = arith.constant 0 : i32
    %c0_i32_0 = arith.constant 0 : i32
    return %arg0, %arg1, %c0_i32 : i32, i32, i32
  }
  func.func @transform_3(%arg0: i32, %arg1: i32) -> (i32, i32, i32) {
    %c0_i32 = arith.constant 0 : i32
    %c0_i32_0 = arith.constant 0 : i32
    return %arg0, %arg1, %c0_i32 : i32, i32, i32
  }
  func.func @transform_4(%arg0: i32, %arg1: i32) -> (i32, i32, i32, i32) {
    %c0_i32 = arith.constant 0 : i32
    %c0_i32_0 = arith.constant 0 : i32
    %c0_i32_1 = arith.constant 0 : i32
    return %arg0, %arg1, %c0_i32, %c0_i32_0 : i32, i32, i32, i32
  }
}

</mosaic_0001>

<bundles_post_ra>
// kernel: tpu_custom_call.1
= control target key start
LH: loop header
LB: loop body
LE: loop exit
PB: predicated region body
PF: predicated region fallthrough
CT: control target
= control target key end

     0   :  { %s1259_s0 = inlined_call_operand.hbm [shape: f32[2,4,2,128], index: 0, kind: input, shape index: {}]   ;;  %s1260_s1 = inlined_call_operand.hbm [shape: s32[2,2,128], index: 1, kind: input, shape index: {}]   ;;  %s1261_s2 = inlined_call_operand.hbm [shape: f32[2,2,128], index: 2, kind: output, shape index: {0}]   ;;  %s1262_s3 = inlined_call_operand.hbm [shape: f32[2,2,128], index: 3, kind: output, shape index: {1}]   ;;  %s1263_s4 = inlined_call_operand.hbm [shape: s32[2,1,1,128], index: 4, kind: output, shape index: {2}]  }
   0x1   :  { %1267 = sst [smem:[#allocation15_spill]] %s1259_s0 }
   0x2   :  { %10 = vsyncpa [#allocation3], 0 }
   0x3   :  { %12 = vsyncpa [#allocation3 + $0x1], 0 }
   0x4   :  { %13 = vsyncpa [#allocation6], 0 }
   0x5   :  { %15 = vsyncpa [#allocation6 + $0x1], 0 }
   0x6   :  { %16 = vsyncpa [#allocation4], 0 }
   0x7   :  { %18 = vsyncpa [#allocation4 + $0x1], 0 }
   0x8   :  { %19 = vsyncpa [#allocation9], 0 }
   0x9   :  { %21 = vsyncpa [#allocation9 + $0x1], 0  ;;  %s935_s15 = smov 0   ;;  %s937_s16 = smov 0  }
   0xa   :  { %s939_s17 = smov 0   ;;  %s941_s18 = smov 0  }
   0xb   :  { %s943_s19 = smov 0   ;;  %s945_s20 = smov 0  }
   0xc LB: > { %s966_s21 = sadd.s32 4294967295, %s900_s20   ;;  %s1265_s22 = sadd.s32 4294967294, %s900_s20   ;;  %s900_s20 = sphi %s945_s20, %s27_s20   ;;  %s896_s19 = sphi %s943_s19, %s1286_s19   ;;  %s892_s18 = sphi %s941_s18, %s1285_s18   ;;  %s888_s17 = sphi %s939_s17, %s1284_s17   ;;  %s884_s16 = sphi %s937_s16, %s1283_s16   ;;  %s880_s15 = sphi %s935_s15, %s1282_s15  }
   0xd   : > { %s39_s23 = sadd.s32 1, %s896_s19  ;;  %s48_s24 = sadd.s32 1, %s888_s17 }
   0xe   : > { %p41_p0 = scmp.ge.s32.totalorder %s39_s23, 2  ;;  %p55_p1 = scmp.ne.s32.totalorder %s888_s17, %s884_s16 }
   0xf   : > { %p56_p2 = scmp.eq.s32.totalorder %s900_s20, 0  ;;  %p61_p3 = scmp.ne.s32.totalorder %s884_s16, %s880_s15 }
  0x10   : > { %s1288_s23 = smov (%p41_p0, %s39_s23), 0  ;;  %p62_p5 = scmp.eq.s32.totalorder %s966_s21, 0 }
  0x11   : > { %p978_p4 = por %p56_p2, %p55_p1  ;;  %s43_s26 = ssub.s32 %s896_s19, %s1288_s23 }
  0x12   : > { %p115_p6 = scmp.eq.s32.totalorder %s966_s21, 1  ;;  %p46_p7 = scmp.eq.s32.totalorder %s43_s26, 0 }
  0x13   : > { %p986_p8 = por %p62_p5, %p61_p3  ;;  %p121_p10 = scmp.eq.s32.totalorder %s1265_s22, 1 }
  0x14   : > { %p990_p9 = por %p115_p6, %p55_p1  ;;  %p629_p13 = scmp.lt.s32.totalorder %s900_s20, 2 }
  0x15   : > { %s1269_s27 = scalar_select %p986_p8, 1, 0 }
  0x16   : > { %s1270_s28 = scalar_select %p990_p9, 1, 0 }
  0x17   : > { %s997_s29 = scalar_select %p46_p7, %s888_s17, %s48_s24  }
  0x18   : > { %p999_p11 = por %p121_p10, %p61_p3  ;;  %s1006_s5 = sand.u32 1, %s888_s17  }
  0x19   : > { %s584_s6 = sshll.u32 %s1006_s5, 3  ;;  %s601_s7 = sshll.u32 %s896_s19, 7 }
  0x1a   : > { %s1271_s30 = scalar_select %p999_p11, 1, 0 }
  0x1b   : > { %s1272_s0 = sld [smem:[#allocation15_spill]]  ;;  %s201_s11 = scalar_lea.vmem [#allocation2], %s584_s6 }
  0x1c   : > { %s209_s12 = sshll.u32 %s201_s11, 4  ;;  %p1019_p0 = pnand %p629_p13, %p978_p4  ;;  %s1015_s12 = int_to_ptr.vmem [resolvable:$true] %s209_s12 }
  0x1d   : > { %s198_s14 = scalar_lea.sflag [#allocation3], %s1006_s5 }
  0x1e   : > { %p696_p3 = pneg %p1019_p0 }
  0x21   : > { %s1013_s10 = scalar_lea.hbm %s1272_s0, %s601_s7  ;;  %s699_s25 = scalar_lea.hbm %s1272_s0, 256 }
  0x22   : > { %s694_s24 = scalar_lea.hbm %s1013_s10, 128  ;;  %p700_p4 = scmp.lt.u32.totalorder %s1013_s10, %s1272_s0 }
  0x23   : > { %p695_p2 = scmp.ne.s32.totalorder %s1013_s10, %s694_s24  ;;  %p701_p7 = scmp.lt.u32.totalorder %s699_s25, %s694_s24 }
  0x24   : > { %p703_p13 = scmp.lt.u32.totalorder %s694_s24, %s1013_s10 }
  0x25   : > { %p697_p5 = pnand %p696_p3, %p695_p2  ;;  %p702_p10 = por %p701_p7, %p700_p4 }
  0x27   : > { %p698_p6 = pneg %p697_p5  ;;  %p704_p12 = por %p703_p13, %p702_p10 }
  0x29   : > { %p705_p1 = pnand %p704_p12, %p698_p6 }
  0x2b   : > { %708 = shalt.err (!%p705_p1)
}
  0x2c   : > { %s709_s9 = scalar_lea.vmem %s1015_s12, 128  ;;  %s902_s11 = smov [#allocation2]  }
  0x2d   : > { %p710_p2 = scmp.ne.s32.totalorder %s1015_s12, %s709_s9  ;;  %s714_s26 = sshll.u32 %s902_s11, 4  ;;  %s715_s26 = int_to_ptr.vmem [resolvable:$false] %s714_s26 }
  0x2e   : > { %s716_s6 = scalar_lea.vmem %s715_s26, 256  ;;  %p717_p9 = scmp.lt.s32.totalorder %s1015_s12, %s715_s26 }
  0x2f   : > { %p712_p5 = pnand %p710_p2, %p696_p3  ;;  %p718_p4 = scmp.lt.s32.totalorder %s716_s6, %s709_s9 }
  0x31   : > { %p713_p11 = pneg %p712_p5  ;;  %p719_p7 = por %p718_p4, %p717_p9 }
  0x33   : > { %p720_p10 = pnand %p719_p7, %p713_p11 }
  0x35   : > { %723 = shalt.err (!%p720_p10)
}
  0x36   : > { %s903_s24 = smov 32   ;;  %s904_s25 = smov 2  }
  0x37   : > { %615 = dma.hbm_to_vmem [thread:$0]  (!%p1019_p0), %s1013_s10, 128, %s1015_s12, %s198_s14, %s903_s24, %s903_s24, %s904_s25  }
  0x38   : > { %p236_p12 = scmp.lt.s32.totalorder %s900_s20, 3  ;;  %s587_s7 = sshll.u32 %s1006_s5, 1 }
  0x39   : > { %s588_s8 = sshll.u32 %s896_s19, 5  ;;  %p1274_p9 = scmp.ge.s32.totalorder %s900_s20, 1 }
  0x3a   : > { %s1064_s6 = scalar_lea.hbm %s1260_s1, %s588_s8  ;;  %s223_s22 = scalar_lea.vmem [#allocation5], %s587_s7 }
  0x3b   : > { %p1057_p11 = pnand %p1274_p9, %p236_p12  ;;  %s231_s0 = sshll.u32 %s223_s22, 4  ;;  %s232_s0 = int_to_ptr.vmem [resolvable:$true] %s231_s0 }
  0x3c   : > { %s220_s10 = scalar_lea.sflag [#allocation6], %s1006_s5  ;;  %s724_s12 = scalar_lea.hbm %s1064_s6, 32 }
  0x3d   : > { %s1275_s9 = scalar_select %p1057_p11, 1, 0 }
  0x3e   : > { %p725_p1 = scmp.ne.s32.totalorder %s1064_s6, %s724_s12  ;;  %s729_s25 = scalar_lea.hbm %s1260_s1, 64 }
  0x3f   : > { %p730_p2 = scmp.lt.u32.totalorder %s1064_s6, %s1260_s1  ;;  %p731_p5 = scmp.lt.u32.totalorder %s729_s25, %s724_s12 }
  0x40   : > { %p727_p6 = pnand %p725_p1, %p696_p3  ;;  %p733_p7 = scmp.lt.u32.totalorder %s724_s12, %s1064_s6 }
  0x41   : > { %p732_p4 = por %p731_p5, %p730_p2 }
  0x42   : > { %p728_p13 = pneg %p727_p6 }
  0x43   : > { %p734_p10 = por %p733_p7, %p732_p4 }
  0x45   : > { %p735_p12 = pnand %p734_p10, %p728_p13 }
  0x47   : > { %738 = shalt.err (!%p735_p12)
}
  0x48   : > { %s739_s22 = scalar_lea.vmem %s232_s0, 32  ;;  %s905_s5 = smov [#allocation5]  }
  0x49   : > { %p740_p9 = scmp.ne.s32.totalorder %s232_s0, %s739_s22  ;;  %s744_s7 = sshll.u32 %s905_s5, 4  ;;  %s745_s7 = int_to_ptr.vmem [resolvable:$false] %s744_s7 }
  0x4a   : > { %s746_s26 = scalar_lea.vmem %s745_s7, 64  ;;  %p747_p8 = scmp.lt.s32.totalorder %s232_s0, %s745_s7 }
  0x4b   : > { %p742_p1 = pnand %p740_p9, %p696_p3  ;;  %p748_p11 = scmp.lt.s32.totalorder %s746_s26, %s739_s22 }
  0x4d   : > { %p743_p6 = pneg %p742_p1  ;;  %p749_p2 = por %p748_p11, %p747_p8 }
  0x4f   : > { %p750_p5 = pnand %p749_p2, %p743_p6 }
  0x51   : > { %753 = shalt.err (!%p750_p5)
}
  0x52   : > { %618 = dma.hbm_to_vmem [thread:$0]  (!%p1019_p0), %s1064_s6, 32, %s232_s0, %s220_s10  }
  0x53   : > { %p1276_p13 = scmp.ne.s32.totalorder %s1275_s9, 0 }
  0x54   : > { %s1089_s12 = sand.u32 (!%p1276_p13), 1, %s884_s16   ;;  %p1277_p3 = scmp.ne.s32.totalorder (!%p1276_p13), %s1269_s27, 0 }
  0x55   : > { %240 = sbr.rel (%p1276_p13) target bundleno = 208 (0xd0), region = 28  ;;  %s590_s14 = sshll.u32 (!%p1276_p13), %s1089_s12, 3 }
  0x56   : > { %s243_s24 = scalar_lea.sflag (!%p1276_p13), [#allocation3], %s1089_s12  ;;  %s246_s25 = scalar_lea.vmem (!%p1276_p13), [#allocation2], %s590_s14 }
  0x5c   : > { %863 = dma.done.wait (%p1277_p3), %s243_s24, 128  }
  0x5d   : > { %865 = vsyncadd (%p1277_p3), %s243_s24, 4294967168  ;;  %s1098_s0 = sshll.u32 %s1089_s12, 1  ;;  %s252_s13 = scalar_lea.sflag [#allocation6], %s1089_s12 }
  0x5e   : > { %s255_s9 = scalar_lea.vmem [#allocation5], %s1098_s0 }
  0x5f   : > { %867 = dma.done.wait (%p1277_p3), %s252_s13, 32  }
  0x60   : > { %869 = vsyncadd (%p1277_p3), %s252_s13, 4294967264  ;;  %vm299_vm0 = vcmask 1041408   ;;  %v294_v0 = vld [vmem:[%s246_s25] sm:$0x3]  ;;  %v295_v1 = vld [vmem:[%s246_s25 + $0x2] sm:$0x3] }
  0x61   : > { %v296_v2 = vld [vmem:[%s246_s25 + $0x4] sm:$0x3]  ;;  %v297_v3 = vld [vmem:[%s246_s25 + $0x6] sm:$0x3]  ;;  %v1106_v4 = vld [vmem:[%s255_s9] sm:$0x3] }
  0x62   : > { %v300_v5 = vsel %vm299_vm0, %v294_v0, -inf  ;;  %v301_v6 = vsel %vm299_vm0, %v295_v1, -inf  ;;  %v302_v7 = vsel %vm299_vm0, %v296_v2, -inf  ;;  %v303_v8 = vsel %vm299_vm0, %v297_v3, -inf  ;;  %s293_s27 = scalar_lea.vmem [#allocation10], %s1089_s12  ;;  %s287_s6 = scalar_lea.vmem [#allocation8], %s1098_s0 }
  0x63   : > { %v304_v9 = vmax.f32 %v300_v5, %v301_v6  ;;  %v305_v10 = vmax.f32 %v302_v7, %v303_v8  ;;  %vm329_vm1 = vcmp.ne.s32.totalorder %v1106_v4, 255  ;;  %v906_v12 = vmov 0   ;;  %s402_s10 = sshll.u32 %s287_s6, 4  ;;  %s369_s8 = sand.u32 1, %s966_s21   ;;  %s1136_s10 = int_to_ptr.vmem [resolvable:$true] %s402_s10 }
  0x64   : > { %v355_v13 = vsel %vm329_vm1, 1, %v906_v12  ;;  %v330_v30 = vsel %vm329_vm1, %v1106_v4, 0  ;;  %s596_s11 = sshll.u32 %s892_s18, 5  ;;  %s416_s22 = sshll.u32 %s293_s27, 4  ;;  %s1147_s22 = int_to_ptr.vmem [resolvable:$true] %s416_s22 }
  0x65   : > { %v306_v11 = vmax.f32 %v304_v9, %v305_v10  ;;  %v356_v18 = vsel %vm299_vm0, %v355_v13, 0  ;;  %vm331_vm2 = vcmp.eq.s32.totalorder %v330_v30, 0  ;;  %vm332_vm3 = vcmp.eq.s32.totalorder %v330_v30, 1  ;;  %s598_s5 = sshll.u32 %s892_s18, 4  ;;  %s1143_s14 = scalar_lea.hbm %s1262_s3, %s596_s11 }
  0x66   : > { %v357_v23 = vrot.slane %v356_v18, 4  ;;  %v335_v40 = vsel %vm331_vm2, %v294_v0, 0.0  ;;  %v336_v41 = vsel %vm332_vm3, %v295_v1, 0.0  ;;  %vm333_vm4 = vcmp.eq.s32.totalorder %v330_v30, 2  ;;  %s1152_s25 = scalar_lea.hbm %s1263_s4, %s598_s5  ;;  %s1154_s13 = scalar_lea.sflag [#allocation9], %s369_s8 }
  0x67   : > { %v307_v14 = vsub.f32 %v294_v0, %v306_v11  ;;  %v308_v15 = vsub.f32 %v295_v1, %v306_v11  ;;  %v309_v16 = vsub.f32 %v296_v2, %v306_v11  ;;  %v310_v17 = vsub.f32 %v297_v3, %v306_v11  ;;  %s754_s9 = scalar_lea.vmem %s1136_s10, 32  ;;  %p1278_p0 = scmp.ne.s32.totalorder %s1270_s28, 0 }
  0x68   : > { %v358_v24 = vadd.s32 %v357_v23, %v356_v18  ;;  %v339_v43 = vsel %vm299_vm0, %v335_v40, 0.0  ;;  %v340_v44 = vsel %vm299_vm0, %v336_v41, 0.0  ;;  %v337_v45 = vsel %vm333_vm4, %v296_v2, 0.0  ;;  %p755_p8 = scmp.ne.s32.totalorder %s1136_s10, %s754_s9 }
  0x69   : > { %v311_v19 = vmul.f32 1.442695, %v307_v14  ;;  %v313_v20 = vmul.f32 1.442695, %v308_v15  ;;  %v315_v21 = vmul.f32 1.442695, %v309_v16  ;;  %v341_v46 = vadd.f32 %v340_v44, %v339_v43 }
  0x6a   : > { %v317_v22 = vmul.f32 1.442695, %v310_v17  ;;  %v359_v25 = vrot.slane %v358_v24, 2  ;;  %vm334_vm5 = vcmp.eq.s32.totalorder %v330_v30, 3  ;;  %v342_v47 = vsel %vm299_vm0, %v337_v45, 0.0  ;;  %p756_p11 = pnand %p755_p8, %p1278_p0 }
  0x6b   : > { %682 = vpow2.f32 %v311_v19  ;;  %v338_v48 = vsel %vm334_vm5, %v297_v3, 0.0  ;;  %v343_v49 = vadd.f32 %v342_v47, %v341_v46 }
  0x6c   : > { %684 = vpow2.f32 %v313_v20  ;;  %v360_v26 = vadd.s32 %v359_v25, %v358_v24  ;;  %v344_v50 = vsel %vm299_vm0, %v338_v48, 0.0  ;;  %p757_p4 = pneg %p756_p11 }
  0x6d   : > { %686 = vpow2.f32 %v315_v21  ;;  %v345_v53 = vadd.f32 %v344_v50, %v343_v49 }
  0x6e   : > { %688 = vpow2.f32 %v317_v22  ;;  %v361_v27 = vrot.slane %v360_v26, 1 }
  0x70   : > { %v362_v28 = vadd.s32 %v361_v27, %v360_v26 }
  0x72   : > { %363 = vst [vmem:[%s293_s27] sm:$0x1] %v362_v28  ;;  %s907_s27 = smov [#allocation8]  }
  0x73   : > { %s758_s7 = sshll.u32 %s907_s27, 4  ;;  %s759_s7 = int_to_ptr.vmem [resolvable:$false] %s758_s7 }
  0x74   : > { %s760_s26 = scalar_lea.vmem %s759_s7, 64  ;;  %p761_p7 = scmp.lt.s32.totalorder %s1136_s10, %s759_s7 }
  0x75   : > { %v683_v29 = vpop.eup %682  ;;  %p762_p10 = scmp.lt.s32.totalorder %s760_s26, %s754_s9 }
  0x76   : > { %v685_v31 = vpop.eup %684  ;;  %v319_v32 = vsel %vm299_vm0, %v683_v29, 0.0 }
  0x77   : > { %v687_v33 = vpop.eup %686  ;;  %v320_v34 = vsel %vm299_vm0, %v685_v31, 0.0  ;;  %p763_p12 = por %p762_p10, %p761_p7 }
  0x78   : > { %v689_v35 = vpop.eup %688  ;;  %v321_v36 = vadd.f32 %v320_v34, %v319_v32  ;;  %v322_v37 = vsel %vm299_vm0, %v687_v33, 0.0 }
  0x79   : > { %v324_v38 = vsel %vm299_vm0, %v689_v35, 0.0  ;;  %p764_p9 = pnand %p763_p12, %p757_p4 }
  0x7a   : > { %v323_v39 = vadd.f32 %v322_v37, %v321_v36 }
  0x7c   : > { %v325_v42 = vadd.f32 %v324_v38, %v323_v39 }
  0x7e   : > { %690 = vlog2.f32 %v325_v42 }
  0x88   : > { %v691_v51 = vpop.eup %690 }
  0x89   : > { %v327_v52 = vmul.f32 0.6931472, %v691_v51 }
  0x8b   : > { %v328_v54 = vadd.f32 %v327_v52, %v306_v11 }
  0x8d   : > { %v346_v55 = vsub.f32 %v328_v54, %v345_v53 }
  0x8f   : > { %v347_v56 = vsub.f32 0.0, %v346_v55  ;;  %v353_v57 = vsel %vm329_vm1, %v346_v55, 0.0 }
  0x90   : > { %354 = vst [vmem:[%s287_s6] sm:$0x3] %v353_v57 }
  0x91   : > { %v348_v58 = vmul.f32 1.442695, %v347_v56 }
  0x92   : > { %767 = shalt.err (!%p764_p9)
}
  0x93   : > { %s768_s6 = scalar_lea.hbm %s1143_s14, 32  ;;  %s772_s21 = scalar_lea.hbm %s1262_s3, 64 }
  0x94   : > { %p769_p1 = scmp.ne.s32.totalorder %s1143_s14, %s768_s6  ;;  %p773_p5 = scmp.lt.u32.totalorder %s1143_s14, %s1262_s3 }
  0x95   : > { %p774_p13 = scmp.lt.u32.totalorder %s772_s21, %s768_s6  ;;  %p776_p8 = scmp.lt.u32.totalorder %s768_s6, %s1143_s14 }
  0x96   : > { %p770_p6 = pnand %p769_p1, %p1278_p0 }
  0x97   : > { %p775_p3 = por %p774_p13, %p773_p5 }
  0x98   : > { %p771_p2 = pneg %p770_p6 }
  0x99   : > { %p777_p11 = por %p776_p8, %p775_p3 }
  0x9b   : > { %p778_p4 = pnand %p777_p11, %p771_p2 }
  0x9d   : > { %781 = shalt.err (!%p778_p4)
}
  0x9e   : > { %607 = dma.vmem_to_hbm [thread:$0]  (%p1278_p0), %s1136_s10, 32, %s1143_s14, %s1154_s13  }
  0x9f   : > { %s782_s9 = scalar_lea.vmem %s1147_s22, 16  ;;  %s908_s7 = smov [#allocation10]  }
  0xa0   : > { %p783_p7 = scmp.ne.s32.totalorder %s1147_s22, %s782_s9  ;;  %s786_s26 = sshll.u32 %s908_s7, 4  ;;  %s787_s26 = int_to_ptr.vmem [resolvable:$false] %s786_s26 }
  0xa1   : > { %s788_s6 = scalar_lea.vmem %s787_s26, 32  ;;  %p789_p9 = scmp.lt.s32.totalorder %s1147_s22, %s787_s26 }
  0xa2   : > { %p784_p10 = pnand %p783_p7, %p1278_p0  ;;  %p790_p1 = scmp.lt.s32.totalorder %s788_s6, %s782_s9 }
  0xa4   : > { %p785_p12 = pneg %p784_p10  ;;  %p791_p6 = por %p790_p1, %p789_p9 }
  0xa6   : > { %p792_p2 = pnand %p791_p6, %p785_p12 }
  0xa8   : > { %795 = shalt.err (!%p792_p2)
}
  0xa9   : > { %s796_s10 = scalar_lea.hbm %s1152_s25, 16  ;;  %s800_s5 = scalar_lea.hbm %s1263_s4, 32 }
  0xaa   : > { %p797_p5 = scmp.ne.s32.totalorder %s1152_s25, %s796_s10  ;;  %p801_p8 = scmp.lt.u32.totalorder %s1152_s25, %s1263_s4 }
  0xab   : > { %p802_p11 = scmp.lt.u32.totalorder %s800_s5, %s796_s10  ;;  %p804_p7 = scmp.lt.u32.totalorder %s796_s10, %s1152_s25 }
  0xac   : > { %p798_p13 = pnand %p797_p5, %p1278_p0 }
  0xad   : > { %p803_p4 = por %p802_p11, %p801_p8 }
  0xae   : > { %p799_p3 = pneg %p798_p13 }
  0xaf   : > { %p805_p10 = por %p804_p7, %p803_p4 }
  0xb1   : > { %p806_p12 = pnand %p805_p10, %p799_p3 }
  0xb3   : > { %809 = shalt.err (!%p806_p12)
}
  0xb4   : > { %608 = dma.vmem_to_hbm [thread:$0]  (%p1278_p0), %s1147_s22, 16, %s1152_s25, %s1154_s13   ;;  %692 = vpow2.f32 %v348_v58 }
  0xb5   : > { %s280_s27 = scalar_lea.vmem [#allocation7], %s1098_s0  ;;  %s1208_s6 = scalar_lea.hbm %s1261_s2, %s596_s11 }
  0xb6   : > { %s388_s9 = sshll.u32 %s280_s27, 4  ;;  %s365_s22 = scalar_lea.sflag [#allocation4], %s1089_s12  ;;  %s1201_s9 = int_to_ptr.vmem [resolvable:$true] %s388_s9 }
  0xb7   : > { %s810_s0 = scalar_lea.vmem %s1201_s9, 32  ;;  %s909_s25 = smov [#allocation7]  }
  0xb8   : > { %p811_p9 = scmp.ne.s32.totalorder %s1201_s9, %s810_s0  ;;  %s814_s18 = sshll.u32 %s909_s25, 4  ;;  %s815_s18 = int_to_ptr.vmem [resolvable:$false] %s814_s18 }
  0xb9   : > { %s816_s13 = scalar_lea.vmem %s815_s18, 64  ;;  %p817_p2 = scmp.lt.s32.totalorder %s1201_s9, %s815_s18 }
  0xba   : > { %p812_p1 = pnand %p811_p9, %p1278_p0  ;;  %p818_p5 = scmp.lt.s32.totalorder %s816_s13, %s810_s0 }
  0xbc   : > { %p813_p6 = pneg %p812_p1  ;;  %p819_p13 = por %p818_p5, %p817_p2 }
  0xbe   : > { %v693_v59 = vpop.eup %692  ;;  %p820_p3 = pnand %p819_p13, %p813_p6 }
  0xbf   : > { %v350_v60 = vmin.f32 %v693_v59, 1.0 }
  0xc1   : > { %v351_v61 = vsel %vm329_vm1, %v350_v60, 2.0 }
  0xc2   : > { %352 = vst [vmem:[%s280_s27] sm:$0x3] %v351_v61 }
  0xc3   : > { %823 = shalt.err (!%p820_p3)
}
  0xc4   : > { %s824_s12 = scalar_lea.hbm %s1208_s6, 32  ;;  %s828_s14 = scalar_lea.hbm %s1261_s2, 64 }
  0xc5   : > { %p825_p8 = scmp.ne.s32.totalorder %s1208_s6, %s824_s12  ;;  %p829_p7 = scmp.lt.u32.totalorder %s1208_s6, %s1261_s2 }
  0xc6   : > { %p830_p10 = scmp.lt.u32.totalorder %s828_s14, %s824_s12  ;;  %p832_p9 = scmp.lt.u32.totalorder %s824_s12, %s1208_s6 }
  0xc7   : > { %p826_p11 = pnand %p825_p8, %p1278_p0 }
  0xc8   : > { %p831_p12 = por %p830_p10, %p829_p7 }
  0xc9   : > { %p827_p4 = pneg %p826_p11 }
  0xca   : > { %p833_p1 = por %p832_p9, %p831_p12 }
  0xcc   : > { %p834_p6 = pnand %p833_p1, %p827_p4 }
  0xce   : > { %837 = shalt.err (!%p834_p6)
}
  0xcf   : > { %606 = dma.vmem_to_hbm [thread:$0]  (%p1278_p0), %s1201_s9, 32, %s1208_s6, %s365_s22  }
  0xd0 PF: > { %s428_s21 = sand.u32 1, %s880_s15   ;;  %p1279_p2 = scmp.ne.s32.totalorder %s1271_s30, 0 }
  0xd1   : > { %p1280_p5 = scmp.ge.s32.totalorder %s900_s20, 2  ;;  %s429_s24 = scalar_lea.sflag [#allocation4], %s428_s21 }
  0xd3   : > { %p620_p13 = pnand %p1280_p5, %p1279_p2 }
  0xd5   : > { %871 = dma.done.wait (!%p620_p13), %s429_s24, 32  }
  0xd6   : > { %873 = vsyncadd (!%p620_p13), %s429_s24, 4294967264  ;;  %s1281_s27 = sadd.s32 4294967294, %s900_s20  }
  0xd7   : > { %s437_s7 = sand.u32 1, %s1281_s27  }
  0xd8   : > { %s438_s26 = scalar_lea.sflag [#allocation9], %s437_s7 }
  0xd9   : > { %875 = dma.done.wait (!%p620_p13), %s438_s26, 48  }
  0xda   : > { %877 = vsyncadd (!%p620_p13), %s438_s26, 4294967248  ;;  %s27_s20 = sadd.s32 1, %s900_s20   ;;  %s1282_s15 = smov %s884_s16 }
  0xdb   : > { %p24_p0 = scmp.ge.s32.totalorder %s27_s20, 4   ;;  %s1283_s16 = smov %s888_s17 }
  0xdc   : > { %s1284_s17 = smov %s997_s29  ;;  %s1285_s18 = smov %s896_s19 }
  0xdd   : > { %s1286_s19 = smov %s1288_s23  ;;  %26 = sbr.rel (!%p24_p0) target bundleno = 12 (0xc), region = 118 }
  0xe4   :  { %451 = vsyncpa [#allocation3], 1 }
  0xe5   :  { %453 = vsyncpa [#allocation3 + $0x1], 1 }
  0xe6   :  { %454 = vsyncpa [#allocation6], 1 }
  0xe7   :  { %456 = vsyncpa [#allocation6 + $0x1], 1 }
  0xe8   :  { %457 = vsyncpa [#allocation4], 1 }
  0xe9   :  { %459 = vsyncpa [#allocation4 + $0x1], 1 }
  0xea   :  { %460 = vsyncpa [#allocation9], 1 }
  0xeb   :  { %462 = vsyncpa [#allocation9 + $0x1], 1 }

</bundles_post_ra>
